<compile_context>
chip_gen: v7x
topology: tpu7x:2x2x1
jax: 0.10.0
libtpu: 0.0.40
codegen_flags: <defaults>
</compile_context>

<pallas_src>
import functools

import jax
import jax.numpy as jnp
from jax.experimental import pallas as pl
from jax.experimental.pallas import tpu as pltpu


def _round_up(x, m):
    return ((x + m - 1) // m) * m


def _sc_attention_kernel(p_ref, q_ref, m_ref, pb_ref, nz_ref, wm_ref, bm_ref,
                         o_ref):
    BT, TP, Hp = o_ref.shape

    p = p_ref[...]                        # (BT, TP, Hp)  native dtype
    q = q_ref[...]                        # (BT, Qp, Hp)  native dtype
    mask = m_ref[...]                     # (BT, 1,  Qp)  f32, 0 on padded cols
    pad_bias = pb_ref[...]                # (1,  1,  Qp)  f32, -1e30 on padded cols
    n_zero = nz_ref[...]                  # (BT, 1,  1 )  f32, # real masked cols

    # scores[b,i,j] = sum_h p[b,i,h] * q[b,j,h]  (contract last dims, no q.T)
    scores = jax.lax.dot_general(
        p, q, (((2,), (2,)), ((0,), (0,))),
        preferred_element_type=jnp.float32)             # (BT, TP, Qp) f32

    # masked_softmax (memory_efficient=False path), fused + deferred norm:
    #   softmax(s*m)*m / (sum + 1e-13)  ==  e*m / (sum(e*m) + 1e-13*sum(e))
    # Padded (beyond-Q) columns are pushed to -1e30 so they never win the max
    # and their exp underflows to exactly 0; genuinely masked real columns
    # keep s=0 exactly like the reference.
    s = scores * mask + pad_bias
    s_max = jnp.max(s, axis=-1, keepdims=True)           # (BT, TP, 1)
    e = jnp.exp(s - s_max)                                # padded cols -> 0
    rm = e * mask
    sum_rm = jnp.sum(rm, axis=-1, keepdims=True)
    # sum(e) over real columns, without a second lane reduction:
    # masked real columns all have s=0, i.e. e = exp(-s_max).  The min() clamp
    # only matters when n_zero==0 (then s_max may be <0) and the term is 0.
    se = sum_rm + n_zero * jnp.exp(jnp.minimum(-s_max, 0.0))
    denom = sum_rm + 1e-13 * se
    inv = pl.reciprocal(denom, approx=True)               # (BT, TP, 1)

    # ctx[b,i,h] = (sum_j rm[b,i,j] * q[b,j,h]) * inv[b,i]
    ctx = jax.lax.dot_general(
        rm.astype(q.dtype), q, (((2,), (1,)), ((0,), (0,))),
        preferred_element_type=jnp.float32)               # (BT, TP, Hp) f32
    ctx = ctx * inv

    # relu(map_linear(ctx)); nn.Linear weight is (out, in): y = x @ W^T + b.
    # TP is a multiple of the dtype's sublane packing, so this reshape is a
    # free re-view (no VMEM relayout) for f32 and bf16 alike.
    wm = wm_ref[...]                                      # (Hp, Hp) native dtype
    ctx2 = ctx.reshape(BT * TP, Hp).astype(wm.dtype)
    y = jax.lax.dot_general(
        ctx2, wm, (((1,), (1,)), ((), ())),
        preferred_element_type=jnp.float32)               # (BT*TP, Hp) f32
    y = y + bm_ref[...]                                   # bias f32, (1, Hp)
    o_ref[...] = jnp.maximum(y, 0.0).reshape(BT, TP, Hp).astype(o_ref.dtype)


def sc_attention(passage, question, q_mask, map_w, map_b, *,
                 block_b=16, block_p=256):
    """passage (B,P,H), question (B,Q,H), q_mask (B,Q) in {0,1}."""
    B, P, H = passage.shape
    Bq, Q, Hq = question.shape
    assert Bq == B and Hq == H

    dtype = passage.dtype
    itemsize = jnp.dtype(dtype).itemsize
    sub = max(8, 32 // itemsize)        # sublane packing: 8 f32 / 16 bf16
    Hp = _round_up(H, 128)              # lane-dense hidden dim
    Qp = _round_up(Q, 128)              # lane-dense scores / mask dim

    # Passage tile (sublane-aligned) and batch tile; keep >=2 total grid
    # steps whenever B > 1 so both v7x TensorCores get work.
    TP = min(_round_up(P, sub), _round_up(block_p, sub))
    Pp = _round_up(P, TP)
    BT = max(1, min(block_b, B))
    p_steps = Pp // TP
    if B > 1 and p_steps * (-(-B // BT)) < 2:
        BT = (B + 1) // 2
    Bp = _round_up(B, BT)

    def pad_to(x, shape):
        pads = tuple((0, t - s) for s, t in zip(x.shape, shape))
        if all(p == (0, 0) for p in pads):
            return x                    # no-op: no extra HBM pass
        return jnp.pad(x, pads)

    p_pad = pad_to(passage, (Bp, Pp, Hp))
    q_pad = pad_to(question, (Bp, Qp, Hp))

    q_maskf = q_mask.astype(jnp.float32)
    m_pad = pad_to(q_maskf, (Bp, Qp)).reshape(Bp, 1, Qp)

    # Per-row count of genuinely masked (real, mask==0) columns.  Padded batch
    # rows get n_zero = Q, keeping their (discarded) denominators finite.
    counts = jnp.sum(q_maskf, axis=-1)                    # (B,)
    nz_pad = (jnp.float32(Q) - pad_to(counts, (Bp,))).reshape(Bp, 1, 1)

    # Additive bias that removes padded Q columns from the softmax exactly.
    if Qp != Q:
        pad_bias = jnp.where(jnp.arange(Qp) < Q, 0.0, -1e30)
        pad_bias = pad_bias.astype(jnp.float32).reshape(1, 1, Qp)
    else:
        pad_bias = jnp.zeros((1, 1, Qp), jnp.float32)

    # Weight stays in matmul dtype (bf16 stays bf16); bias pre-cast to f32.
    w_pad = pad_to(map_w, (Hp, Hp)).astype(dtype)
    b_pad = pad_to(map_b, (Hp,)).astype(jnp.float32).reshape(1, Hp)

    # VMEM budget for this tiling (double-buffered blocks + f32 temps).
    vmem_bytes = (
        2 * BT * TP * Hp * itemsize           # passage blocks
        + 2 * BT * Qp * Hp * itemsize         # question blocks
        + 2 * BT * TP * Hp * itemsize         # output blocks
        + 2 * Hp * Hp * itemsize              # resident map_linear weight
        + 2 * (BT * Qp + Qp + Hp + BT) * 4    # mask / pad_bias / bias / n_zero
        + 4 * BT * TP * Qp * 4                # softmax f32 temps
        + 2 * BT * TP * Hp * 4                # ctx / linear f32 temps
    )
    vmem_limit = int(min(max(2 * vmem_bytes, 32 * 1024 * 1024),
                         48 * 1024 * 1024))

    out = pl.pallas_call(
        _sc_attention_kernel,
        out_shape=jax.ShapeDtypeStruct((Bp, Pp, Hp), dtype),
        grid_spec=pltpu.PrefetchScalarGridSpec(
            num_scalar_prefetch=0,
            grid=(Bp // BT, Pp // TP),
            in_specs=[
                pl.BlockSpec((BT, TP, Hp), lambda b, p: (b, p, 0)),   # passage
                pl.BlockSpec((BT, Qp, Hp), lambda b, p: (b, 0, 0)),   # question
                pl.BlockSpec((BT, 1, Qp), lambda b, p: (b, 0, 0)),    # mask
                pl.BlockSpec((1, 1, Qp), lambda b, p: (0, 0, 0)),     # pad bias
                pl.BlockSpec((BT, 1, 1), lambda b, p: (b, 0, 0)),     # n_zero
                pl.BlockSpec((Hp, Hp), lambda b, p: (0, 0)),          # W (resident)
                pl.BlockSpec((1, Hp), lambda b, p: (0, 0)),           # bias (resident)
            ],
            out_specs=pl.BlockSpec((BT, TP, Hp), lambda b, p: (b, p, 0)),
        ),
        compiler_params=pltpu.CompilerParams(
            dimension_semantics=("parallel", "parallel"),
            vmem_limit_bytes=vmem_limit),
    )(p_pad, q_pad, m_pad, pad_bias, nz_pad, w_pad, b_pad)

    if (Bp, Pp, Hp) != (B, P, H):
        out = out[:B, :P, :H]
    return out


def _reference(passage, question, q_mask, map_w, map_b):
    """Pure-JAX reference mirroring the PyTorch forward."""
    scores = jnp.einsum("bph,bqh->bpq", passage, question)
    mask = q_mask.astype(jnp.float32)[:, None, :]             # (B,1,Q)
    sm = jax.nn.softmax(scores * mask, axis=-1)
    r = sm * mask
    alpha = r / (jnp.sum(r, axis=-1, keepdims=True) + 1e-13)
    out = jnp.einsum("bpq,bqh->bph", alpha, question)
    out = out @ map_w.T + map_b
    return jax.nn.relu(out)


if __name__ == "__main__":
    B, P, Q, H = 2, 8, 8, 32
    key = jax.random.PRNGKey(0)
    k1, k2, k3, k4, k5 = jax.random.split(key, 5)

    passage = jax.random.normal(k1, (B, P, H), dtype=jnp.float32)
    question = jax.random.normal(k2, (B, Q, H), dtype=jnp.float32)
    # binary mask with some padded positions
    q_mask = (jax.random.uniform(k3, (B, Q)) > 0.3).astype(jnp.float32)
    q_mask = q_mask.at[:, 0].set(1.0)  # guarantee at least one valid token

    # map_linear parameters (H -> H), xavier-uniform style init.
    limit = (6.0 / (H + H)) ** 0.5
    map_w = jax.random.uniform(k4, (H, H), minval=-limit, maxval=limit,
                               dtype=jnp.float32)
    map_b = jax.random.uniform(k5, (H,), minval=-0.1, maxval=0.1,
                               dtype=jnp.float32)

    out = sc_attention(passage, question, q_mask, map_w, map_b)
    out = jax.block_until_ready(out)

    ref = _reference(passage, question, q_mask, map_w, map_b)
    assert out.shape == (B, P, H)
    # Tolerance accounts for the EUP approximate reciprocal (approx=True) in
    # the deferred softmax normalization; gross errors (mask/transpose bugs)
    # are O(1) and would still trip this check.
    assert jnp.allclose(out, ref, atol=1e-2, rtol=1e-2), \
        float(jnp.max(jnp.abs(out - ref)))

    print("KERNEL_OK")
</pallas_src>

<mosaic_0001>
module attributes {stable_mosaic.version = 11 : i64} {
  func.func @_sc_attention_kernel(%arg0: i32, %arg1: i32, %arg2: memref<1x8x128xf32, #tpu.memory_space<vmem>>, %arg3: memref<1x128x128xf32, #tpu.memory_space<vmem>>, %arg4: memref<1x1x128xf32, #tpu.memory_space<vmem>>, %arg5: memref<1x1x128xf32, #tpu.memory_space<vmem>>, %arg6: memref<1x1x1xf32, #tpu.memory_space<vmem>>, %arg7: memref<128x128xf32, #tpu.memory_space<vmem>>, %arg8: memref<1x128xf32, #tpu.memory_space<vmem>>, %arg9: memref<1x8x128xf32, #tpu.memory_space<vmem>>) attributes {dimension_semantics = [#tpu.dimension_semantics<parallel>, #tpu.dimension_semantics<parallel>], iteration_bounds = array<i64: 2, 1>, scalar_prefetch = 0 : i64, scratch_operands = 0 : i64, tpu.core_type = #tpu.core_type<tc>, window_params = [{transform_indices = @transform_0, window_bounds = array<i64: 1, 8, 128>}, {transform_indices = @transform_1, window_bounds = array<i64: 1, 128, 128>}, {transform_indices = @transform_2, window_bounds = array<i64: 1, 1, 128>}, {pipeline_mode = #tpu.pipeline_mode<synchronous>, transform_indices = @transform_3, window_bounds = array<i64: 1, 1, 128>}, {transform_indices = @transform_4, window_bounds = array<i64: 1, 1, 1>}, {pipeline_mode = #tpu.pipeline_mode<synchronous>, transform_indices = @transform_5, window_bounds = array<i64: 128, 128>}, {pipeline_mode = #tpu.pipeline_mode<synchronous>, transform_indices = @transform_6, window_bounds = array<i64: 1, 128>}, {transform_indices = @transform_7, window_bounds = array<i64: 1, 8, 128>}]} {
    %c0 = arith.constant 0 : index
    %c0_0 = arith.constant 0 : index
    %c0_1 = arith.constant 0 : index
    %0 = vector.load %arg2[%c0, %c0_0, %c0_1] : memref<1x8x128xf32, #tpu.memory_space<vmem>>, vector<1x8x128xf32>
    %c0_2 = arith.constant 0 : index
    %c0_3 = arith.constant 0 : index
    %c0_4 = arith.constant 0 : index
    %1 = vector.load %arg3[%c0_2, %c0_3, %c0_4] : memref<1x128x128xf32, #tpu.memory_space<vmem>>, vector<1x128x128xf32>
    %c0_5 = arith.constant 0 : index
    %c0_6 = arith.constant 0 : index
    %c0_7 = arith.constant 0 : index
    %2 = vector.load %arg4[%c0_5, %c0_6, %c0_7] : memref<1x1x128xf32, #tpu.memory_space<vmem>>, vector<1x1x128xf32>
    %c0_8 = arith.constant 0 : index
    %c0_9 = arith.constant 0 : index
    %c0_10 = arith.constant 0 : index
    %3 = vector.load %arg5[%c0_8, %c0_9, %c0_10] : memref<1x1x128xf32, #tpu.memory_space<vmem>>, vector<1x1x128xf32>
    %c0_11 = arith.constant 0 : index
    %c0_12 = arith.constant 0 : index
    %c0_13 = arith.constant 0 : index
    %4 = vector.load %arg6[%c0_11, %c0_12, %c0_13] : memref<1x1x1xf32, #tpu.memory_space<vmem>>, vector<1x1x1xf32>
    %cst = arith.constant dense<0.000000e+00> : vector<1x8x128xf32>
    %5 = tpu.matmul %0, %1, %cst {dimension_numbers = #tpu.dot_dimension_numbers<[2], [2], [1], [1], [0, 0, 0, 1, 1, 1], [0], [0]>} : vector<1x8x128xf32>, vector<1x128x128xf32>, vector<1x8x128xf32> -> vector<1x8x128xf32>
    %6 = vector.broadcast %2 : vector<1x1x128xf32> to vector<1x8x128xf32>
    %7 = arith.mulf %5, %6 : vector<1x8x128xf32>
    %8 = vector.broadcast %3 : vector<1x1x128xf32> to vector<1x8x128xf32>
    %9 = arith.addf %7, %8 : vector<1x8x128xf32>
    %cst_14 = arith.constant dense<0xFF800000> : vector<1x8xf32>
    %10 = vector.multi_reduction <maximumf>, %9, %cst_14 [2] : vector<1x8x128xf32> to vector<1x8xf32>
    %11 = vector.shape_cast %10 : vector<1x8xf32> to vector<1x8x1xf32>
    %12 = vector.broadcast %11 : vector<1x8x1xf32> to vector<1x8x128xf32>
    %13 = arith.subf %9, %12 : vector<1x8x128xf32>
    %14 = math.exp %13 : vector<1x8x128xf32>
    %15 = vector.broadcast %2 : vector<1x1x128xf32> to vector<1x8x128xf32>
    %16 = arith.mulf %14, %15 : vector<1x8x128xf32>
    %cst_15 = arith.constant dense<0.000000e+00> : vector<1x8xf32>
    %17 = vector.multi_reduction <add>, %16, %cst_15 [2] : vector<1x8x128xf32> to vector<1x8xf32>
    %18 = vector.shape_cast %17 : vector<1x8xf32> to vector<1x8x1xf32>
    %cst_16 = arith.constant 0.000000e+00 : f32
    %19 = vector.broadcast %cst_16 : f32 to vector<1x8x1xf32>
    %20 = arith.subf %19, %11 : vector<1x8x1xf32>
    %cst_17 = arith.constant 0.000000e+00 : f32
    %21 = vector.broadcast %cst_17 : f32 to vector<1x8x1xf32>
    %22 = arith.minimumf %20, %21 : vector<1x8x1xf32>
    %23 = math.exp %22 : vector<1x8x1xf32>
    %24 = vector.broadcast %4 : vector<1x1x1xf32> to vector<1x8x1xf32>
    %25 = arith.mulf %24, %23 : vector<1x8x1xf32>
    %26 = arith.addf %18, %25 : vector<1x8x1xf32>
    %cst_18 = arith.constant 9.99999982E-14 : f32
    %27 = vector.broadcast %cst_18 : f32 to vector<1x8x1xf32>
    %28 = arith.mulf %27, %26 : vector<1x8x1xf32>
    %29 = arith.addf %18, %28 : vector<1x8x1xf32>
    %30 = tpu.reciprocal %29 {approx = true} : vector<1x8x1xf32> -> vector<1x8x1xf32>
    %cst_19 = arith.constant dense<0.000000e+00> : vector<1x8x128xf32>
    %31 = tpu.matmul %16, %1, %cst_19 {dimension_numbers = #tpu.dot_dimension_numbers<[2], [1], [1], [2], [0, 0, 0, 1, 1, 2], [0], [0]>} : vector<1x8x128xf32>, vector<1x128x128xf32>, vector<1x8x128xf32> -> vector<1x8x128xf32>
    %32 = vector.broadcast %30 : vector<1x8x1xf32> to vector<1x8x128xf32>
    %33 = arith.mulf %31, %32 : vector<1x8x128xf32>
    %c0_20 = arith.constant 0 : index
    %c0_21 = arith.constant 0 : index
    %34 = vector.load %arg7[%c0_20, %c0_21] : memref<128x128xf32, #tpu.memory_space<vmem>>, vector<128x128xf32>
    %35 = vector.shape_cast %33 : vector<1x8x128xf32> to vector<8x128xf32>
    %cst_22 = arith.constant dense<0.000000e+00> : vector<8x128xf32>
    %36 = tpu.matmul %35, %34, %cst_22 {dimension_numbers = #tpu.dot_dimension_numbers<[1], [1], [0], [0], [0, 0, 1, 0], [], []>} : vector<8x128xf32>, vector<128x128xf32>, vector<8x128xf32> -> vector<8x128xf32>
    %c0_23 = arith.constant 0 : index
    %c0_24 = arith.constant 0 : index
    %37 = vector.load %arg8[%c0_23, %c0_24] : memref<1x128xf32, #tpu.memory_space<vmem>>, vector<1x128xf32>
    %38 = vector.broadcast %37 : vector<1x128xf32> to vector<8x128xf32>
    %39 = arith.addf %36, %38 : vector<8x128xf32>
    %cst_25 = arith.constant 0.000000e+00 : f32
    %40 = vector.broadcast %cst_25 : f32 to vector<8x128xf32>
    %41 = arith.maximumf %39, %40 : vector<8x128xf32>
    %42 = vector.shape_cast %41 : vector<8x128xf32> to vector<1x8x128xf32>
    %c0_26 = arith.constant 0 : index
    %c0_27 = arith.constant 0 : index
    %c0_28 = arith.constant 0 : index
    %43 = vector.load %arg9[%c0_26, %c0_27, %c0_28] : memref<1x8x128xf32, #tpu.memory_space<vmem>>, vector<1x8x128xf32>
    tpu.vector_store %arg9[%c0_26, %c0_27, %c0_28], %42 {strides = array<i32>} : memref<1x8x128xf32, #tpu.memory_space<vmem>>, vector<1x8x128xf32>,
    return
  }
  func.func @transform_0(%arg0: i32, %arg1: i32) -> (i32, i32, i32) {
    %c0_i32 = arith.constant 0 : i32
    %c0_i32_0 = arith.constant 0 : i32
    return %arg0, %arg1, %c0_i32 : i32, i32, i32
  }
  func.func @transform_1(%arg0: i32, %arg1: i32) -> (i32, i32, i32) {
    %c0_i32 = arith.constant 0 : i32
    %c0_i32_0 = arith.constant 0 : i32
    %c0_i32_1 = arith.constant 0 : i32
    return %arg0, %c0_i32, %c0_i32_0 : i32, i32, i32
  }
  func.func @transform_2(%arg0: i32, %arg1: i32) -> (i32, i32, i32) {
    %c0_i32 = arith.constant 0 : i32
    %c0_i32_0 = arith.constant 0 : i32
    %c0_i32_1 = arith.constant 0 : i32
    return %arg0, %c0_i32, %c0_i32_0 : i32, i32, i32
  }
  func.func @transform_3(%arg0: i32, %arg1: i32) -> (i32, i32, i32) {
    %c0_i32 = arith.constant 0 : i32
    %c0_i32_0 = arith.constant 0 : i32
    %c0_i32_1 = arith.constant 0 : i32
    %c0_i32_2 = arith.constant 0 : i32
    return %c0_i32, %c0_i32_0, %c0_i32_1 : i32, i32, i32
  }
  func.func @transform_4(%arg0: i32, %arg1: i32) -> (i32, i32, i32) {
    %c0_i32 = arith.constant 0 : i32
    %c0_i32_0 = arith.constant 0 : i32
    %c0_i32_1 = arith.constant 0 : i32
    return %arg0, %c0_i32, %c0_i32_0 : i32, i32, i32
  }
  func.func @transform_5(%arg0: i32, %arg1: i32) -> (i32, i32) {
    %c0_i32 = arith.constant 0 : i32
    %c0_i32_0 = arith.constant 0 : i32
    %c0_i32_1 = arith.constant 0 : i32
    return %c0_i32, %c0_i32_0 : i32, i32
  }
  func.func @transform_6(%arg0: i32, %arg1: i32) -> (i32, i32) {
    %c0_i32 = arith.constant 0 : i32
    %c0_i32_0 = arith.constant 0 : i32
    %c0_i32_1 = arith.constant 0 : i32
    return %c0_i32, %c0_i32_0 : i32, i32
  }
  func.func @transform_7(%arg0: i32, %arg1: i32) -> (i32, i32, i32) {
    %c0_i32 = arith.constant 0 : i32
    %c0_i32_0 = arith.constant 0 : i32
    return %arg0, %arg1, %c0_i32 : i32, i32, i32
  }
}

</mosaic_0001>

<bundles_post_ra>
// kernel: tpu_custom_call.1
= control target key start
LH: loop header
LB: loop body
LE: loop exit
PB: predicated region body
PF: predicated region fallthrough
CT: control target
= control target key end

     0   :  { %s1749_s0 = inlined_call_operand.hbm [shape: f32[2,8,128], index: 0, kind: input, shape index: {}]   ;;  %s1750_s1 = inlined_call_operand.hbm [shape: f32[2,128,128], index: 1, kind: input, shape index: {}]   ;;  %s1751_s2 = inlined_call_operand.vmem [shape: f32[2,1,128], index: 2, kind: input, shape index: {}]   ;;  %s1752_s3 = inlined_call_operand.vmem [shape: f32[1,1,128], index: 3, kind: input, shape index: {}]   ;;  %s1753_s4 = inlined_call_operand.vmem [shape: f32[2,1,1], index: 4, kind: input, shape index: {}]   ;;  %s1754_s5 = inlined_call_operand.hbm [shape: f32[128,128], index: 5, kind: input, shape index: {}]   ;;  %s1755_s6 = inlined_call_operand.vmem [shape: f32[1,128], index: 6, kind: input, shape index: {}]   ;;  %s1756_s7 = inlined_call_operand.hbm [shape: f32[2,8,128], index: 7, kind: output, shape index: {}]  }
   0x1   :  { %1764 = sst [smem:[#allocation16_spill]] %s1749_s0 }
   0x2   :  { %1765 = sst [smem:[#allocation17_spill]] %s1754_s5 }
   0x3   :  { %12 = vsyncpa [#allocation3], 0 }
   0x4   :  { %14 = vsyncpa [#allocation3 + $0x1], 0 }
   0x5   :  { %15 = vsyncpa [#allocation6], 0 }
   0x6   :  { %17 = vsyncpa [#allocation6 + $0x1], 0 }
   0x7   :  { %18 = vsyncpa [#allocation4], 0 }
   0x8   :  { %20 = vsyncpa [#allocation4 + $0x1], 0  ;;  %s1410_s24 = smov 0   ;;  %s1412_s25 = smov 0  }
   0x9   :  { %s1414_s26 = smov 0   ;;  %s1416_s27 = smov 0  }
   0xa   :  { %s1418_s28 = smov 0   ;;  %s1420_s29 = smov 0  }
   0xb LB: > { %1766 = sst [smem:[#allocation13_spill]] %s1346_s26  ;;  %s1441_s30 = sadd.s32 4294967295, %s1358_s29   ;;  %s1358_s29 = sphi %s1420_s29, %s26_s29   ;;  %s1354_s28 = sphi %s1418_s28, %s1794_s28   ;;  %s1350_s27 = sphi %s1416_s27, %s1793_s27   ;;  %s1346_s26 = sphi %s1414_s26, %s1789_s26   ;;  %s1342_s25 = sphi %s1412_s25, %s1792_s25   ;;  %s1338_s24 = sphi %s1410_s24, %s1791_s24  }
   0xc   : > { %s837_s8 = sadd.s32 4294967294, %s1358_s29   ;;  %p60_p0 = scmp.ne.s32.totalorder %s1342_s25, %s1338_s24 }
   0xd   : > { %p1757_p1 = scmp.eq.s32.totalorder %s1441_s30, 0  ;;  %p233_p3 = scmp.eq.s32.totalorder %s837_s8, 1 }
   0xe   : > { %p838_p5 = scmp.ge.s32.totalorder %s1358_s29, 1  ;;  %p240_p7 = scmp.lt.s32.totalorder %s1358_s29, 3 }
   0xf   : > { %p1450_p4 = por %p1757_p1, %p60_p0  ;;  %p1455_p6 = por %p233_p3, %p60_p0 }
  0x10   : > { %p1460_p8 = pnand %p838_p5, %p240_p7  ;;  %s1360_s12 = smov [#allocation7]  }
  0x11   : > { %s1767_s9 = scalar_select %p1450_p4, 1, 0 }
  0x12   : > { %s1768_s10 = scalar_select %p1455_p6, 1, 0 }
  0x13   : > { %s1769_s11 = scalar_select %p1460_p8, 1, 0 }
  0x14   : > { %s255_s13 = sshll.u32 %s1360_s12, 4  ;;  %p1098_p9 = pneg %p1460_p8  ;;  %s256_s13 = int_to_ptr.vmem [resolvable:$true] %s255_s13 }
  0x15   : > { %s38_s15 = sadd.s32 1, %s1354_s28  ;;  %s1771_s5 = sld [smem:[#allocation17_spill]] }
  0x16   : > { %p1469_p11 = pnand %p1098_p9, %p1757_p1 }
  0x18   : > { %p1182_p13 = pneg %p1469_p11 }
  0x1b   : > { %s1180_s18 = scalar_lea.hbm %s1771_s5, 2048 }
  0x1c   : > { %p1181_p12 = scmp.ne.s32.totalorder %s1771_s5, %s1180_s18  ;;  %p1187_p5 = scmp.lt.u32.totalorder %s1180_s18, %s1771_s5 }
  0x1e   : > { %p1183_p0 = pnand %p1182_p13, %p1181_p12 }
  0x20   : > { %p1184_p3 = pneg %p1183_p0 }
  0x22   : > { %p1189_p7 = pnand %p1187_p5, %p1184_p3 }
  0x24   : > { %1192 = shalt.err (!%p1189_p7)
}
  0x25   : > { %s1193_s23 = scalar_lea.vmem %s256_s13, 2048  ;;  %p1201_p2 = scmp.lt.s32.totalorder %s256_s13, %s256_s13 }
  0x26   : > { %p1194_p9 = scmp.ne.s32.totalorder %s256_s13, %s1193_s23  ;;  %p1202_p6 = scmp.lt.s32.totalorder %s1193_s23, %s1193_s23 }
  0x28   : > { %p1196_p10 = pnand %p1194_p9, %p1182_p13  ;;  %p1203_p4 = por %p1202_p6, %p1201_p2 }
  0x2a   : > { %p1197_p1 = pneg %p1196_p10 }
  0x2c   : > { %p1204_p8 = pnand %p1203_p4, %p1197_p1 }
  0x2e   : > { %1207 = shalt.err (!%p1204_p8)
}
  0x2f   : > { %s1760_s8 = smov 128   ;;  %s1761_s12 = smov 8  }
  0x30   : > { %1101 = dma.hbm_to_vmem [thread:$0]  (!%p1469_p11), %s1771_s5, 2048, %s256_s13, [#allocation6], %s1760_s8, %s1760_s8, %s1761_s12  }
  0x31   : > { %p40_p1 = scmp.ge.s32.totalorder %s38_s15, 2  ;;  %s47_s18 = sadd.s32 1, %s1346_s26 }
  0x32   : > { %p54_p2 = scmp.ne.s32.totalorder %s1346_s26, %s1342_s25  ;;  %p55_p4 = scmp.eq.s32.totalorder %s1358_s29, 0 }
  0x33   : > { %s1796_s15 = smov (%p40_p1, %s38_s15), 0  ;;  %p1774_p8 = scmp.eq.s32.totalorder %s1441_s30, 1 }
  0x34   : > { %1772 = sst [smem:[#allocation14_spill]] %s1796_s15  ;;  %p1499_p6 = por %p55_p4, %p54_p2 }
  0x35   : > { %p1505_p10 = por %p1774_p8, %p54_p2  ;;  %s42_s20 = ssub.s32 %s1354_s28, %s1796_s15 }
  0x36   : > { %p1114_p11 = scmp.lt.s32.totalorder %s1358_s29, 2  ;;  %p45_p12 = scmp.eq.s32.totalorder %s42_s20, 0 }
  0x37   : > { %s1513_s13 = sand.u32 1, %s1346_s26   ;;  %s842_s23 = sshll.u32 %s1354_s28, 7 }
  0x38   : > { %s841_s21 = sshll.u32 %s1513_s13, 3  ;;  %s1777_s0 = sld [smem:[#allocation16_spill]] }
  0x39   : > { %s1517_s22 = scalar_select %p45_p12, %s1346_s26, %s47_s18  }
  0x3a   : > { %s276_s12 = scalar_lea.vmem [#allocation2], %s841_s21  ;;  %p1529_p13 = pnand %p1114_p11, %p1499_p6 }
  0x3b   : > { %1776 = sst [smem:[#allocation15_spill]] %s1517_s22  ;;  %s284_s20 = sshll.u32 %s276_s12, 4  ;;  %s1525_s20 = int_to_ptr.vmem [resolvable:$true] %s284_s20 }
  0x3c   : > { %s843_s18 = sshll.u32 %s1513_s13, 7  ;;  %s273_s16 = scalar_lea.sflag [#allocation3], %s1513_s13 }
  0x3d   : > { %p1210_p3 = pneg %p1529_p13 }
  0x3e   : > { %s1523_s8 = scalar_lea.hbm %s1777_s0, %s842_s23  ;;  %s1213_s19 = scalar_lea.hbm %s1777_s0, 256 }
  0x3f   : > { %s1208_s23 = scalar_lea.hbm %s1523_s8, 128  ;;  %p1214_p9 = scmp.lt.u32.totalorder %s1523_s8, %s1777_s0 }
  0x40   : > { %p1209_p0 = scmp.ne.s32.totalorder %s1523_s8, %s1208_s23  ;;  %p1215_p1 = scmp.lt.u32.totalorder %s1213_s19, %s1208_s23 }
  0x41   : > { %p1217_p4 = scmp.lt.u32.totalorder %s1208_s23, %s1523_s8 }
  0x42   : > { %p1211_p5 = pnand %p1210_p3, %p1209_p0  ;;  %p1216_p2 = por %p1215_p1, %p1214_p9 }
  0x44   : > { %p1212_p7 = pneg %p1211_p5  ;;  %p1218_p6 = por %p1217_p4, %p1216_p2 }
  0x46   : > { %p1219_p8 = pnand %p1218_p6, %p1212_p7 }
  0x48   : > { %1222 = shalt.err (!%p1219_p8)
}
  0x49   : > { %s1223_s15 = scalar_lea.vmem %s1525_s20, 128  ;;  %s1363_s12 = smov [#allocation2]  }
  0x4a   : > { %p1224_p11 = scmp.ne.s32.totalorder %s1525_s20, %s1223_s15  ;;  %s1228_s21 = sshll.u32 %s1363_s12, 4  ;;  %s1229_s21 = int_to_ptr.vmem [resolvable:$false] %s1228_s21 }
  0x4b   : > { %s1230_s22 = scalar_lea.vmem %s1229_s21, 256  ;;  %p1231_p5 = scmp.lt.s32.totalorder %s1525_s20, %s1229_s21 }
  0x4c   : > { %p1226_p12 = pnand %p1224_p11, %p1210_p3  ;;  %p1232_p9 = scmp.lt.s32.totalorder %s1230_s22, %s1223_s15 }
  0x4e   : > { %p1227_p0 = pneg %p1226_p12  ;;  %p1233_p1 = por %p1232_p9, %p1231_p5 }
  0x50   : > { %p1234_p2 = pnand %p1233_p1, %p1227_p0 }
  0x52   : > { %1237 = shalt.err (!%p1234_p2)
}
  0x53   : > { %1105 = dma.hbm_to_vmem [thread:$0]  (!%p1529_p13), %s1523_s8, 128, %s1525_s20, %s273_s16  }
  0x54   : > { %s295_s23 = scalar_lea.vmem [#allocation5], %s843_s18  ;;  %s291_s17 = sand.u32 1, %s1358_s29  }
  0x55   : > { %s302_s19 = sshll.u32 %s295_s23, 4  ;;  %s1779_s12 = sshll.u32 %s1354_s28, 11  ;;  %s1564_s19 = int_to_ptr.vmem [resolvable:$true] %s302_s19 }
  0x56   : > { %s1571_s22 = scalar_lea.hbm %s1750_s1, %s1779_s12  ;;  %s1573_s0 = scalar_lea.sflag [#allocation6], %s291_s17 }
  0x57   : > { %s1238_s26 = scalar_lea.hbm %s1571_s22, 2048  ;;  %s1243_s20 = scalar_lea.hbm %s1750_s1, 4096 }
  0x58   : > { %p1239_p7 = scmp.ne.s32.totalorder %s1571_s22, %s1238_s26  ;;  %p1244_p8 = scmp.lt.u32.totalorder %s1571_s22, %s1750_s1 }
  0x59   : > { %p1245_p11 = scmp.lt.u32.totalorder %s1243_s20, %s1238_s26  ;;  %p1247_p0 = scmp.lt.u32.totalorder %s1238_s26, %s1571_s22 }
  0x5a   : > { %p1241_p4 = pnand %p1239_p7, %p1210_p3 }
  0x5b   : > { %p1246_p12 = por %p1245_p11, %p1244_p8 }
  0x5c   : > { %p1242_p6 = pneg %p1241_p4 }
  0x5d   : > { %p1248_p5 = por %p1247_p0, %p1246_p12 }
  0x5f   : > { %p1249_p9 = pnand %p1248_p5, %p1242_p6 }
  0x61   : > { %1252 = shalt.err (!%p1249_p9)
}
  0x62   : > { %s1253_s23 = scalar_lea.vmem %s1564_s19, 2048  ;;  %s1364_s17 = smov [#allocation5]  }
  0x63   : > { %p1254_p1 = scmp.ne.s32.totalorder %s1564_s19, %s1253_s23  ;;  %s1258_s12 = sshll.u32 %s1364_s17, 4  ;;  %s1259_s12 = int_to_ptr.vmem [resolvable:$false] %s1258_s12 }
  0x64   : > { %s1260_s15 = scalar_lea.vmem %s1259_s12, 4096  ;;  %p1261_p4 = scmp.lt.s32.totalorder %s1564_s19, %s1259_s12 }
  0x65   : > { %p1256_p2 = pnand %p1254_p1, %p1210_p3  ;;  %p1262_p8 = scmp.lt.s32.totalorder %s1260_s15, %s1253_s23 }
  0x67   : > { %p1257_p7 = pneg %p1256_p2  ;;  %p1263_p11 = por %p1262_p8, %p1261_p4 }
  0x69   : > { %p1264_p12 = pnand %p1263_p11, %p1257_p7 }
  0x6b   : > { %1267 = shalt.err (!%p1264_p12)
}
  0x6c   : > { %s1780_s26 = smov 8   ;;  %s1781_s21 = smov 128  }
  0x6d   : > { %1108 = dma.hbm_to_vmem [thread:$0]  (!%p1529_p13), %s1571_s22, 2048, %s1564_s19, %s1573_s0, %s1781_s21, %s1781_s21, %s1780_s26  }
  0x6e   : > { %p1782_p3 = scmp.ne.s32.totalorder %s1769_s11, 0 }
  0x6f   : > { %s1605_s8 = sand.u32 (!%p1782_p3), 1, %s1342_s25   ;;  %p1783_p6 = scmp.ne.s32.totalorder (!%p1782_p3), %s1767_s9, 0 }
  0x70   : > { %326 = sbr.rel (%p1782_p3) target bundleno = 1086 (0x43e), region = 48  ;;  %s847_s13 = sshll.u32 (!%p1782_p3), %s1605_s8, 3 }
  0x71   : > { %s329_s20 = scalar_lea.sflag (!%p1782_p3), [#allocation3], %s1605_s8  ;;  %s1611_s5 = scalar_lea.vmem (!%p1782_p3), [#allocation2], %s847_s13 }
  0x77   : > { %1321 = dma.done.wait (%p1783_p6), %s329_s20, 128  }
  0x78   : > { %1323 = vsyncadd (%p1783_p6), %s329_s20, 4294967168  ;;  %s337_s0 = sand.u32 1, %s1441_s30   ;;  %s848_s11 = sshll.u32 %s1605_s8, 7 }
  0x79   : > { %s338_s19 = scalar_lea.sflag [#allocation6], %s337_s0  ;;  %s1619_s22 = scalar_lea.vmem [#allocation5], %s848_s11 }
  0x7a   : > { %1325 = dma.done.wait (%p1783_p6), %s338_s19, 2048  }
  0x7b   : > { %1327 = vsyncadd (%p1783_p6), %s338_s19, 4294965248  ;;  %p1784_p13 = scmp.eq.s32.totalorder %s1441_s30, 0 }
  0x7d   : > { %1329 = dma.done.wait (%p1784_p13), [#allocation6], 2048   ;;  %p1785_p0 = pmov %p1784_p13 }
  0x7e   : > { %v1365_v0 = vmov 0.0|0.0   ;;  %vm1366_vm0 = vmmov 0   ;;  %v1367_v1 = vmov 0.0   ;;  %v394_v2 = vld [vmem:[%s1619_s22] sm:$0xff]  ;;  %v395_v3 = vld [vmem:[%s1619_s22 + $0x8] sm:$0xff]  ;;  %v396_v5 = vld [vmem:[%s1619_s22 + $0x10] sm:$0xff] }
  0x7f   : > { %1331 = vsyncadd (%p1785_p0), [#allocation6], 4294965248  ;;  %1016 = vmatprep.subr.bf16.mxu0 %v1365_v0  ;;  %943 = vmatprep.mubr.msk.f32.mxu0 %vm1366_vm0, %v1367_v1  ;;  %v1017_v4 = vpack.c.bf16 %v395_v3, %v394_v2  ;;  %v397_v6 = vld [vmem:[%s1619_s22 + $0x18] sm:$0xff]  ;;  %v398_v8 = vld [vmem:[%s1619_s22 + $0x20] sm:$0xff]  ;;  %p387_p5 = scmp.lt.s32.totalorder %s1350_s27, 1  ;;  %v1368_v38 = vmov 0  }
  0x80   : > { %1040 = vmatprep.subr.bf16.mxu1 %v1365_v0  ;;  %978 = vmatprep.mubr.msk.f32.mxu1 %vm1366_vm0, %v1367_v1  ;;  %v1020_v7 = vpack.c.bf16 %v397_v6, %v396_v5  ;;  %v399_v9 = vld [vmem:[%s1619_s22 + $0x28] sm:$0xff]  ;;  %v400_v11 = vld [vmem:[%s1619_s22 + $0x30] sm:$0xff]  ;;  %v401_v12 = vld [vmem:[%s1619_s22 + $0x38] sm:$0xff]  ;;  %s386_s0 = scalar_lea.vmem [#allocation8], %s847_s13  ;;  %s692_s9 = scalar_lea.sflag [#allocation4], %s1605_s8 }
  0x81   : > { %1018 = vmatpush3.bf16.xpose.msra.mxu0 %v1017_v4  ;;  %1042 = vmatpush3.bf16.msra.mxu1 %v1017_v4  ;;  %v1023_v10 = vpack.c.bf16 %v399_v9, %v398_v8  ;;  %v1026_v13 = vpack.c.bf16 %v401_v12, %v400_v11  ;;  %v402_v14 = vld [vmem:[%s1619_s22 + $0x40] sm:$0xff]  ;;  %v403_v15 = vld [vmem:[%s1619_s22 + $0x48] sm:$0xff]  ;;  %v404_v17 = vld [vmem:[%s1619_s22 + $0x50] sm:$0xff]  ;;  %s1669_s30 = scalar_select %p387_p5, %s1350_s27, 1 }
  0x82   : > { %1019 = vmatprep.subr.bf16.mxu0 %v1365_v0  ;;  %1043 = vmatprep.subr.bf16.mxu1 %v1365_v0  ;;  %v1029_v16 = vpack.c.bf16 %v403_v15, %v402_v14  ;;  %v405_v18 = vld [vmem:[%s1619_s22 + $0x58] sm:$0xff]  ;;  %v406_v20 = vld [vmem:[%s1619_s22 + $0x60] sm:$0xff]  ;;  %v407_v21 = vld [vmem:[%s1619_s22 + $0x68] sm:$0xff]  ;;  %s706_s11 = sshll.u32 %s386_s0, 4  ;;  %s1702_s11 = int_to_ptr.vmem [resolvable:$true] %s706_s11 }
  0x83   : > { %v1032_v19 = vpack.c.bf16 %v405_v18, %v404_v17  ;;  %v1035_v22 = vpack.c.bf16 %v407_v21, %v406_v20  ;;  %v408_v23 = vld [vmem:[%s1619_s22 + $0x70] sm:$0xff]  ;;  %v409_v24 = vld [vmem:[%s1619_s22 + $0x78] sm:$0xff]  ;;  %s389_s16 = scalar_lea.vmem %s1751_s2, %s1669_s30  ;;  %1172 = vset.pattern.permute.xlu1 %v1368_v38  ;;  %1173 = vset.pattern.permute.xlu0 %v1368_v38  ;;  %v596_v39 = vld [vmem:[#allocation7] sm:$0xff]  ;;  %s392_s26 = scalar_lea.vmem %s1753_s4, %s1669_s30 }
  0x84   : > { %v1038_v25 = vpack.c.bf16 %v409_v24, %v408_v23  ;;  %v393_v26 = vld [vmem:[%s1611_s5] sm:$0xff]  ;;  %v597_v40 = vld [vmem:[#allocation7 + $0x8] sm:$0xff]  ;;  %v600_v45 = vld [vmem:[#allocation7 + $0x20] sm:$0xff]  ;;  %s856_s5 = sshll.u32 %s1350_s27, 7  ;;  %s1268_s18 = scalar_lea.vmem %s1702_s11, 128 }
  0x85   : > { %1045 = vmatpush3.bf16.msra.mxu1 %v1020_v7  ;;  %v851_v27 = vld [vmem:[%s389_s16] ss:$0 sm:$0xff]  ;;  %v1065_v41 = vpack.c.bf16 %v597_v40, %v596_v39  ;;  %v599_v43 = vld [vmem:[#allocation7 + $0x18] sm:$0xff]  ;;  %v601_v46 = vld [vmem:[#allocation7 + $0x28] sm:$0xff]  ;;  %s1700_s30 = scalar_lea.hbm %s1756_s7, %s856_s5  ;;  %p1269_p9 = scmp.ne.s32.totalorder %s1702_s11, %s1268_s18 }
  0x86   : > { %1046 = vmatprep.subr.bf16.mxu1 %v1365_v0  ;;  %v852_v29 = vld [vmem:[%s1752_s3] ss:$0 sm:$0xff]  ;;  %v1071_v47 = vpack.c.bf16 %v601_v46, %v600_v45  ;;  %v603_v49 = vld [vmem:[#allocation7 + $0x38] sm:$0xff]  ;;  %v604_v51 = vld [vmem:[#allocation7 + $0x40] sm:$0xff]  ;;  %s1369_s27 = smov [#allocation8]  }
  0x87   : > { %v598_v42 = vld [vmem:[#allocation7 + $0x10] sm:$0xff]  ;;  %v605_v52 = vld [vmem:[#allocation7 + $0x48] sm:$0xff]  ;;  %v607_v57 = vld [vmem:[#allocation7 + $0x58] sm:$0xff]  ;;  %p1270_p1 = pnand %p1269_p9, %p1505_p10  ;;  %s1272_s13 = sshll.u32 %s1369_s27, 4  ;;  %s1273_s13 = int_to_ptr.vmem [resolvable:$false] %s1272_s13 }
  0x88   : > { %v1068_v44 = vpack.c.bf16 %v599_v43, %v598_v42  ;;  %v602_v48 = vld [vmem:[#allocation7 + $0x30] sm:$0xff]  ;;  %v1077_v54 = vpack.c.bf16 %v605_v52, %v604_v51  ;;  %v608_v60 = vld [vmem:[#allocation7 + $0x60] sm:$0xff]  ;;  %v609_v61 = vld [vmem:[#allocation7 + $0x68] sm:$0xff]  ;;  %s1274_s16 = scalar_lea.vmem %s1273_s13, 256  ;;  %p1275_p7 = scmp.lt.s32.totalorder %s1702_s11, %s1273_s13 }
  0x89   : > { %1021 = vmatpush3.bf16.xpose.msra.mxu0 %v1020_v7  ;;  %1048 = vmatpush3.bf16.msra.mxu1 %v1023_v10  ;;  %v1074_v50 = vpack.c.bf16 %v603_v49, %v602_v48  ;;  %v606_v56 = vld [vmem:[#allocation7 + $0x50] sm:$0xff]  ;;  %v1083_v62 = vpack.c.bf16 %v609_v61, %v608_v60  ;;  %p1271_p2 = pneg %p1270_p1  ;;  %p1276_p4 = scmp.lt.s32.totalorder %s1274_s16, %s1268_s18 }
  0x8a   : > { %1022 = vmatprep.subr.bf16.mxu0 %v1365_v0  ;;  %1049 = vmatprep.subr.bf16.mxu1 %v1365_v0  ;;  %v1080_v59 = vpack.c.bf16 %v607_v57, %v606_v56  ;;  %v610_v63 = vld [vmem:[#allocation7 + $0x70] sm:$0xff] }
  0x8b   : > { %v853_v3 = vld [vmem:[%s392_s26] ss:$0 sm:$0xff]  ;;  %p1277_p8 = por %p1276_p4, %p1275_p7 }
  0x8c   : > { %v854_v14 = vld [vmem:[%s1755_s6] ss:$0 sm:$0xff] }
  0x8d   : > { %1051 = vmatpush3.bf16.msra.mxu1 %v1026_v13  ;;  %p1278_p11 = pnand %p1277_p8, %p1271_p2 }
  0x8e   : > { %1052 = vmatprep.subr.bf16.mxu1 %v1365_v0 }
  0x91   : > { %1024 = vmatpush3.bf16.xpose.msra.mxu0 %v1023_v10  ;;  %1054 = vmatpush3.bf16.msra.mxu1 %v1029_v16 }
  0x92   : > { %1025 = vmatprep.subr.bf16.mxu0 %v1365_v0  ;;  %1055 = vmatprep.subr.bf16.mxu1 %v1365_v0 }
  0x95   : > { %1057 = vmatpush3.bf16.msra.mxu1 %v1032_v19 }
  0x96   : > { %1058 = vmatprep.subr.bf16.mxu1 %v1365_v0 }
  0x99   : > { %1027 = vmatpush3.bf16.xpose.msra.mxu0 %v1026_v13  ;;  %1060 = vmatpush3.bf16.msra.mxu1 %v1035_v22 }
  0x9a   : > { %1028 = vmatprep.subr.bf16.mxu0 %v1365_v0  ;;  %1061 = vmatprep.subr.bf16.mxu1 %v1365_v0 }
  0x9d   : > { %1063 = vmatpush3.bf16.msra.mxu1 %v1038_v25 }
  0x9e   : > { %1064 = vmatprep.subr.bf16.mxu1 %v1365_v0 }
  0xa1   : > { %1030 = vmatpush3.bf16.xpose.msra.mxu0 %v1029_v16 }
  0xa2   : > { %1031 = vmatprep.subr.bf16.mxu0 %v1365_v0 }
  0xa9   : > { %1033 = vmatpush3.bf16.xpose.msra.mxu0 %v1032_v19 }
  0xaa   : > { %1034 = vmatprep.subr.bf16.mxu0 %v1365_v0 }
  0xb1   : > { %1036 = vmatpush3.bf16.xpose.msra.mxu0 %v1035_v22 }
  0xb2   : > { %1037 = vmatprep.subr.bf16.mxu0 %v1365_v0 }
  0xb9   : > { %1039 = vmatpush3.bf16.xpose.msra.mxu0 %v1038_v25 }
  0xc0   : > { %944 = vmatmul.mubr.f32.vlgmr.msra.gmra.mrb[0].mxu0 %v393_v26 }
 0x193   : > { %v479_v28 = vpop.f32.mrb[0].mxu0 }
 0x194   : > { %v489_v30 = vmul.f32 %v851_v27, %v479_v28  ;;  %v945_v31 = vpop.f32.mrb[1].mxu0 }
 0x196   : > { %v496_v32 = vadd.f32 %v852_v29, %v489_v30 }
 0x198   : > { %497 = vmax.xlane.f32.xlu0 %v496_v32 }
 0x225   : > { %v498_v33 = vpop.xlane.xlu0 %497 }
 0x226   : > { %v499_v34 = vsub.f32 %v496_v32, %v498_v33  ;;  %v505_v53 = vsub.f32 0.0, %v498_v33 }
 0x228   : > { %v500_v35 = vmul.f32 1.442695, %v499_v34  ;;  %v506_v55 = vmin.f32 %v505_v53, 0.0 }
 0x22a   : > { %1174 = vpow2.f32 %v500_v35  ;;  %v507_v58 = vmul.f32 1.442695, %v506_v55 }
 0x22c   : > { %1176 = vpow2.f32 %v507_v58 }
 0x234   : > { %v1175_v36 = vpop.eup %1174 }
 0x235   : > { %v502_v37 = vmul.f32 %v1175_v36, %v851_v27 }
 0x236   : > { %v1177_v2 = vpop.eup %1176 }
 0x237   : > { %503 = vadd.xlane.f32.xlu0 %v502_v37  ;;  %979 = vmatmul.mubr.f32.vlgmr.msra.gmra.mrb[0].mxu1 %v502_v37  ;;  %v515_v5 = vmul.f32 %v1177_v2, %v853_v3 }
 0x238   : > { %1013 = vmatprep.mubr.msk.f32.mxu1 %vm1366_vm0, %v1367_v1  ;;  %1066 = vmatpush3.bf16.xpose.msra.mxu1 %v1065_v41  ;;  %v611_v1 = vld [vmem:[#allocation7 + $0x78] sm:$0xff] }
 0x239   : > { %1067 = vmatprep.subr.bf16.mxu1 %v1365_v0  ;;  %v1086_v4 = vpack.c.bf16 %v611_v1, %v610_v63 }
 0x240   : > { %1069 = vmatpush3.bf16.xpose.msra.mxu1 %v1068_v44 }
 0x241   : > { %1070 = vmatprep.subr.bf16.mxu1 %v1365_v0 }
 0x248   : > { %1072 = vmatpush3.bf16.xpose.msra.mxu1 %v1071_v47 }
 0x249   : > { %1073 = vmatprep.subr.bf16.mxu1 %v1365_v0 }
 0x250   : > { %1075 = vmatpush3.bf16.xpose.msra.mxu1 %v1074_v50 }
 0x251   : > { %1076 = vmatprep.subr.bf16.mxu1 %v1365_v0 }
 0x258   : > { %1078 = vmatpush3.bf16.xpose.msra.mxu1 %v1077_v54 }
 0x259   : > { %1079 = vmatprep.subr.bf16.mxu1 %v1365_v0 }
 0x260   : > { %1081 = vmatpush3.bf16.xpose.msra.mxu1 %v1080_v59 }
 0x261   : > { %1082 = vmatprep.subr.bf16.mxu1 %v1365_v0 }
 0x268   : > { %1084 = vmatpush3.bf16.xpose.msra.mxu1 %v1083_v62 }
 0x269   : > { %1085 = vmatprep.subr.bf16.mxu1 %v1365_v0 }
 0x270   : > { %1087 = vmatpush3.bf16.xpose.msra.mxu1 %v1086_v4 }
 0x2c4   : > { %v504_v6 = vpop.xlane.xlu0 %503 }
 0x2c5   : > { %v516_v7 = vadd.f32 %v515_v5, %v504_v6 }
 0x2c7   : > { %v517_v8 = vmul.f32 1e-13, %v516_v7 }
 0x2c9   : > { %v518_v9 = vadd.f32 %v517_v8, %v504_v6 }
 0x2cb   : > { %1178 = vrcp.f32 %v518_v9 }
 0x2d5   : > { %v1179_v10 = vpop.eup %1178 }
 0x2d6   : > { %592 = vperm.xlu1 %1172, %v1179_v10  }
 0x30a   : > { %v586_v11 = vpop.f32.mrb[0].mxu1 }
 0x30b   : > { %v980_v12 = vpop.f32.mrb[1].mxu1 }
 0x355   : > { %v593_v0 = vpop.permute.xlu1 %592 }
 0x356   : > { %v595_v13 = vmul.f32 %v593_v0, %v586_v11 }
 0x358   : > { %1014 = vmatmul.mubr.f32.vlgmr.msra.gmra.mrb[2].mxu1 %v595_v13 }
 0x42b   : > { %v685_v15 = vpop.f32.mrb[2].mxu1 }
 0x42c   : > { %v686_v16 = vadd.f32 %v854_v14, %v685_v15  ;;  %v1015_v17 = vpop.f32.mrb[3].mxu1 }
 0x42e   : > { %v689_v18 = vmax.f32 %v686_v16, 0.0 }
 0x430   : > { %690 = vst [vmem:[%s386_s0] sm:$0xff] %v689_v18 }
 0x431   : > { %1281 = shalt.err (!%p1278_p11)
}
 0x432   : > { %s1282_s8 = scalar_lea.hbm %s1700_s30, 128  ;;  %s1286_s12 = scalar_lea.hbm %s1756_s7, 256 }
 0x433   : > { %p1283_p12 = scmp.ne.s32.totalorder %s1700_s30, %s1282_s8  ;;  %p1287_p13 = scmp.lt.u32.totalorder %s1700_s30, %s1756_s7 }
 0x434   : > { %p1288_p0 = scmp.lt.u32.totalorder %s1286_s12, %s1282_s8  ;;  %p1290_p9 = scmp.lt.u32.totalorder %s1282_s8, %s1700_s30 }
 0x435   : > { %p1284_p3 = pnand %p1283_p12, %p1505_p10 }
 0x436   : > { %p1289_p5 = por %p1288_p0, %p1287_p13 }
 0x437   : > { %p1285_p6 = pneg %p1284_p3 }
 0x438   : > { %p1291_p1 = por %p1290_p9, %p1289_p5 }
 0x43a   : > { %p1292_p2 = pnand %p1291_p1, %p1285_p6 }
 0x43c   : > { %1295 = shalt.err (!%p1292_p2)
}
 0x43d   : > { %1096 = dma.vmem_to_hbm [thread:$0]  (%p1505_p10), %s1702_s11, 128, %s1700_s30, %s692_s9  }
 0x43e PF: > { %s718_s21 = sand.u32 1, %s1338_s24   ;;  %p1786_p7 = scmp.ne.s32.totalorder %s1768_s10, 0 }
 0x43f   : > { %p1787_p4 = scmp.ge.s32.totalorder %s1358_s29, 2  ;;  %s719_s20 = scalar_lea.sflag [#allocation4], %s718_s21 }
 0x441   : > { %p1110_p8 = pnand %p1787_p4, %p1786_p7 }
 0x443   : > { %1333 = dma.done.wait (!%p1110_p8), %s719_s20, 128  }
 0x444   : > { %1335 = vsyncadd (!%p1110_p8), %s719_s20, 4294967168  ;;  %s26_s29 = sadd.s32 1, %s1358_s29   ;;  %s1788_s5 = sld [smem:[#allocation13_spill]] }
 0x445   : > { %p23_p11 = scmp.ge.s32.totalorder %s26_s29, 4   ;;  %s1789_s26 = sld [smem:[#allocation15_spill]] }
 0x446   : > { %s1790_s14 = sld [smem:[#allocation14_spill]]  ;;  %s1791_s24 = smov %s1342_s25 }
 0x447   : > { %s1793_s27 = smov %s1354_s28  ;;  %25 = sbr.rel (!%p23_p11) target bundleno = 11 (0xb), region = 116 }
 0x44a   : > { %s1792_s25 = smov %s1788_s5 }
 0x44c   : > { %s1794_s28 = smov %s1790_s14 }
 0x44e   :  { %724 = vsyncpa [#allocation3], 1 }
 0x44f   :  { %726 = vsyncpa [#allocation3 + $0x1], 1 }
 0x450   :  { %727 = vsyncpa [#allocation6], 1 }
 0x451   :  { %729 = vsyncpa [#allocation6 + $0x1], 1 }
 0x452   :  { %730 = vsyncpa [#allocation4], 1 }
 0x453   :  { %732 = vsyncpa [#allocation4 + $0x1], 1 }

</bundles_post_ra>
